<compile_context>
chip_gen: v7x
topology: tpu7x:2x2x1
jax: 0.10.0
libtpu: 0.0.40
codegen_flags: <defaults>
</compile_context>

<pallas_src>
import math
from functools import partial

import jax
import jax.numpy as jnp
from jax import lax
from jax.experimental import pallas as pl
from jax.experimental.pallas import tpu as pltpu

CHANNELS = (16, 32)   # hidden conv channels, as in CNNFlux.__init__ default
KSIZE = 3             # kernel_size default
CIN0_PAD = 8          # pad the 2 stacked input channels to a full sublane group


def _cnn_flux_kernel(uL_ref, uR_ref, m_ref,
                     w1_ref, b1_ref, w2_ref, b2_ref, w3_ref, b3_ref,
                     o_ref, *, compute_dtype):
    n = o_ref.shape[-1]
    ml = m_ref[0:1, :]                 # (1, N): 1.0 where a left  neighbour exists
    mr = m_ref[1:2, :]                 # (1, N): 1.0 where a right neighbour exists

    # Build the sublane-padded (8, N) layer-1 input in VMEM: row0=uL, row1=uR,
    # rows 2..7 = 0.  Pure iota/select on the VPU -- no host-side channel
    # padding, so HBM input traffic stays at 2 channels per position.
    row = lax.broadcasted_iota(jnp.int32, (CIN0_PAD, n), 0)
    x0 = jnp.where(row == 0, jnp.broadcast_to(uL_ref[0], (CIN0_PAD, n)),
                   jnp.where(row == 1, jnp.broadcast_to(uR_ref[0], (CIN0_PAD, n)),
                             0.0))

    def conv3_relu(x, w_ref, b_ref):
        # "same" 3-tap conv over each length-L segment (zero padding at edges),
        # done as a single im2col matmul with lane-dense operands/result.
        # Cast activations to the MXU operand dtype BEFORE the rolls/concat when
        # the sublane extent stays aligned for the packed dtype (Cin % 16 == 0);
        # otherwise (layer 1's 8-row pieces in bf16) cast at the dot so the
        # sublane concat stays on the aligned fast path.
        pre_cast = (compute_dtype == jnp.float32) or (x.shape[0] % 16 == 0)
        xc = x.astype(compute_dtype) if pre_cast else x
        mlc = ml.astype(xc.dtype)
        mrc = mr.astype(xc.dtype)
        left = pltpu.roll(xc, shift=1, axis=1) * mlc          # x[l-1], masked at l==0
        right = pltpu.roll(xc, shift=n - 1, axis=1) * mrc     # x[l+1], masked at l==L-1
        patches = jnp.concatenate([left, xc, right], axis=0)  # (3*Cin, N)
        y = jnp.dot(w_ref[...], patches.astype(compute_dtype),
                    preferred_element_type=jnp.float32)        # (Cout, N), f32 acc
        return jnp.maximum(y + b_ref[...], 0.0)                # bias + ReLU in f32

    h1 = conv3_relu(x0, w1_ref, b1_ref)    # (16, N)
    h2 = conv3_relu(h1, w2_ref, b2_ref)    # (32, N)

    # Layer 3: Conv1d(32 -> 1, k=1) == per-position channel dot product.
    # Done on the VPU (broadcast multiply) + sublane reduction instead of a
    # degenerate M=1 MXU matmul; output store stays lane-dense.
    y3 = jnp.sum(h2 * w3_ref[...], axis=0, keepdims=True) + b3_ref[...]   # (1, N)
    o_ref[0] = y3.astype(o_ref.dtype)


def _flatten_conv3_weight(w, cin_pad, dtype):
    # torch Conv1d weight (Cout, Cin, K) -> (Cout, K*cin_pad) matmul form with
    # w_flat[oc, k*cin_pad + ic] == W_torch[oc, ic, k]; padded channels are 0.
    cout, cin, k = w.shape
    wp = jnp.zeros((cout, k, cin_pad), jnp.float32)
    wp = wp.at[:, :, :cin].set(jnp.transpose(w, (0, 2, 1)))
    return wp.reshape(cout, k * cin_pad).astype(dtype)


def _pick_tiling(B, L, target_positions=16 * 1024):
    """Pick (tb rows/step, grid G, padded seq-len Lp) such that
       N = tb*Lp is a multiple of 128 (>=512, ~target), and G is even, >= 2."""
    cdiv = lambda a, b: -(-a // b)
    # Only pad the sequence axis if keeping L intact would force a huge tile.
    Lp = L
    if (128 // math.gcd(L, 128)) * L > 2 * target_positions:
        Lp = 128 * cdiv(L, 128)
    tb_unit = 128 // math.gcd(Lp, 128)     # smallest tb with tb*Lp % 128 == 0
    per = tb_unit * Lp
    tb_min = tb_unit * cdiv(512, per)              # N >= 512 lanes
    tb_target = tb_unit * max(1, target_positions // per)
    tb_cap = tb_unit * cdiv(cdiv(B, 2), tb_unit)   # two grid steps already cover B
    tb = max(tb_min, min(tb_target, tb_cap))
    G = max(2, cdiv(B, tb))
    if G % 2:
        G += 1                                     # even grid: both v7x TCs busy
    # Rebalance: smallest multiple of tb_unit so G steps still cover B.
    tb = max(tb_min, tb_unit * cdiv(cdiv(B, G), tb_unit))
    return tb, G, Lp


def cnn_flux_forward(uL, uR, torch_params, *, compute_dtype=jnp.float32,
                     target_positions=16 * 1024,
                     vmem_limit_bytes=48 * 1024 * 1024):
    """uL, uR: (B, L) float32. torch_params: list of (W(Cout,Cin,K), b(Cout,)).

    compute_dtype=jnp.bfloat16 feeds bf16 operands to the MXU (recommended on
    v6e/v7x); accumulation and all VPU math stay f32.  Default f32 matches the
    PyTorch reference to ~1e-4.
    """
    B, L = uL.shape
    tb, G, Lp = _pick_tiling(B, L, target_positions)
    N = tb * Lp
    Bp = G * tb

    (w1, b1), (w2, b2), (w3, b3) = torch_params
    c1, c2 = w1.shape[0], w2.shape[0]
    w1f = _flatten_conv3_weight(w1, CIN0_PAD, compute_dtype)   # (16, 3*8)
    w2f = _flatten_conv3_weight(w2, c1, compute_dtype)         # (32, 3*16)
    w3c = w3.reshape(1, c2).T.astype(jnp.float32)              # (32, 1)
    b1c = b1.reshape(-1, 1).astype(jnp.float32)                # (16, 1)
    b2c = b2.reshape(-1, 1).astype(jnp.float32)                # (32, 1)
    b3c = b3.reshape(1, 1).astype(jnp.float32)                 # (1, 1)

    # uL / uR stay 2 channels in HBM: zero-pad batch/seq to (Bp, Lp) and view
    # each grid step as tb whole rows flattened onto the lane axis.
    def blocks(u):
        u = u.astype(jnp.float32)
        if Bp != B or Lp != L:
            u = jnp.pad(u, ((0, Bp - B), (0, Lp - L)))
        return u.reshape(G, 1, N)

    uLb, uRb = blocks(uL), blocks(uR)

    # Row-boundary masks for the +-1 shifts (identical for every grid step, the
    # constant-index block is DMA'd once and stays resident).  For padded rows/
    # cols the masks guarantee no leakage into real positions.
    l_idx = jnp.arange(N, dtype=jnp.int32) % Lp
    masks = jnp.stack([(l_idx != 0), (l_idx != L - 1)], axis=0).astype(jnp.float32)

    def full(a):
        return pl.BlockSpec(a.shape, lambda i, _r=a.ndim: (0,) * _r)

    out = pl.pallas_call(
        partial(_cnn_flux_kernel, compute_dtype=compute_dtype),
        out_shape=jax.ShapeDtypeStruct((G, 1, N), jnp.float32),
        grid=(G,),
        in_specs=[
            pl.BlockSpec((1, 1, N), lambda i: (i, 0, 0)),   # uL positions
            pl.BlockSpec((1, 1, N), lambda i: (i, 0, 0)),   # uR positions
            full(masks),
            full(w1f), full(b1c),
            full(w2f), full(b2c),
            full(w3c), full(b3c),
        ],
        out_specs=pl.BlockSpec((1, 1, N), lambda i: (i, 0, 0)),
        compiler_params=pltpu.CompilerParams(
            dimension_semantics=("parallel",),
            vmem_limit_bytes=vmem_limit_bytes),
    )(uLb, uRb, masks, w1f, b1c, w2f, b2c, w3c, b3c)

    return out.reshape(Bp, Lp)[:B, :L]


def init_params(key, channels=CHANNELS, ksize=KSIZE):
    """Deterministic kaiming_uniform(relu) weights + zero biases (as in __init__)."""
    layers = []
    in_ch = 2
    for out_ch in channels:
        key, sub = jax.random.split(key)
        bound = math.sqrt(6.0 / (in_ch * ksize))          # gain sqrt(2) * sqrt(3/fan_in)
        w = jax.random.uniform(sub, (out_ch, in_ch, ksize), jnp.float32, -bound, bound)
        layers.append((w, jnp.zeros((out_ch,), jnp.float32)))
        in_ch = out_ch
    key, sub = jax.random.split(key)
    bound = math.sqrt(6.0 / in_ch)
    w = jax.random.uniform(sub, (1, in_ch, 1), jnp.float32, -bound, bound)
    layers.append((w, jnp.zeros((1,), jnp.float32)))
    return layers


def ref_forward(uL, uR, torch_params):
    """Pure-JAX reference mirroring the PyTorch forward (NCW conv)."""
    x = jnp.stack([uL, uR], axis=1)                       # (B, 2, L)
    for idx, (w, b) in enumerate(torch_params):
        k = w.shape[-1]
        x = lax.conv_general_dilated(
            x, w, window_strides=(1,), padding=[(k // 2, k // 2)],
            dimension_numbers=("NCH", "OIH", "NCH"))
        x = x + b[None, :, None]
        if idx < len(torch_params) - 1:
            x = jnp.maximum(x, 0.0)
    return x[:, 0, :]                                     # squeeze(1)


if __name__ == "__main__":
    key = jax.random.PRNGKey(0)
    kp, kd = jax.random.split(key)
    params = init_params(kp)

    # f32 path (bit-accurate vs. PyTorch semantics): several shapes exercising
    # N%128 enforcement, batch padding, even-grid, and the seq-padding path.
    for (B, L) in [(32, 16), (6, 5), (4, 3000)]:
        kd, kL, kR = jax.random.split(kd, 3)
        uL = jax.random.uniform(kL, (B, L), jnp.float32) * 2.0
        uR = jax.random.uniform(kR, (B, L), jnp.float32) * 2.0
        out = cnn_flux_forward(uL, uR, params)
        jax.block_until_ready(out)
        ref = ref_forward(uL, uR, params)
        assert out.shape == (B, L)
        err = float(jnp.max(jnp.abs(out - ref)))
        assert jnp.allclose(out, ref, atol=5e-4, rtol=5e-4), (B, L, err)

    # bf16 MXU operands (recommended on v6e/v7x); accumulation / VPU math in f32.
    B, L = 32, 16
    kd, kL, kR = jax.random.split(kd, 3)
    uL = jax.random.uniform(kL, (B, L), jnp.float32) * 2.0
    uR = jax.random.uniform(kR, (B, L), jnp.float32) * 2.0
    out_bf16 = cnn_flux_forward(uL, uR, params, compute_dtype=jnp.bfloat16)
    jax.block_until_ready(out_bf16)
    ref = ref_forward(uL, uR, params)
    mean_err = float(jnp.mean(jnp.abs(out_bf16 - ref)))
    assert mean_err < 0.1, mean_err

    print("KERNEL_OK")
</pallas_src>

<mosaic_0001>
module attributes {stable_mosaic.version = 11 : i64} {
  func.func @_cnn_flux_kernel(%arg0: i32, %arg1: memref<1x1x512xf32, #tpu.memory_space<vmem>>, %arg2: memref<1x1x512xf32, #tpu.memory_space<vmem>>, %arg3: memref<2x512xf32, #tpu.memory_space<vmem>>, %arg4: memref<16x24xf32, #tpu.memory_space<vmem>>, %arg5: memref<16x1xf32, #tpu.memory_space<vmem>>, %arg6: memref<32x48xf32, #tpu.memory_space<vmem>>, %arg7: memref<32x1xf32, #tpu.memory_space<vmem>>, %arg8: memref<32x1xf32, #tpu.memory_space<vmem>>, %arg9: memref<1x1xf32, #tpu.memory_space<vmem>>, %arg10: memref<1x1x512xf32, #tpu.memory_space<vmem>>) attributes {dimension_semantics = [#tpu.dimension_semantics<parallel>], iteration_bounds = array<i64: 2>, scalar_prefetch = 0 : i64, scratch_operands = 0 : i64, tpu.core_type = #tpu.core_type<tc>, window_params = [{transform_indices = @transform_0, window_bounds = array<i64: 1, 1, 512>}, {transform_indices = @transform_1, window_bounds = array<i64: 1, 1, 512>}, {pipeline_mode = #tpu.pipeline_mode<synchronous>, transform_indices = @transform_2, window_bounds = array<i64: 2, 512>}, {pipeline_mode = #tpu.pipeline_mode<synchronous>, transform_indices = @transform_3, window_bounds = array<i64: 16, 24>}, {pipeline_mode = #tpu.pipeline_mode<synchronous>, transform_indices = @transform_4, window_bounds = array<i64: 16, 1>}, {pipeline_mode = #tpu.pipeline_mode<synchronous>, transform_indices = @transform_5, window_bounds = array<i64: 32, 48>}, {pipeline_mode = #tpu.pipeline_mode<synchronous>, transform_indices = @transform_6, window_bounds = array<i64: 32, 1>}, {pipeline_mode = #tpu.pipeline_mode<synchronous>, transform_indices = @transform_7, window_bounds = array<i64: 32, 1>}, {pipeline_mode = #tpu.pipeline_mode<synchronous>, transform_indices = @transform_8, window_bounds = array<i64: 1, 1>}, {transform_indices = @transform_9, window_bounds = array<i64: 1, 1, 512>}]} {
    %c0 = arith.constant 0 : index
    %c0_0 = arith.constant 0 : index
    %0 = vector.load %arg3[%c0, %c0_0] : memref<2x512xf32, #tpu.memory_space<vmem>>, vector<1x512xf32>
    %c1 = arith.constant 1 : index
    %c0_1 = arith.constant 0 : index
    %1 = vector.load %arg3[%c1, %c0_1] : memref<2x512xf32, #tpu.memory_space<vmem>>, vector<1x512xf32>
    %2 = tpu.iota {dimensions = array<i32: 0>} : vector<8x512xi32>
    %c0_i32 = arith.constant 0 : i32
    %3 = vector.broadcast %c0_i32 : i32 to vector<8x512xi32>
    %4 = arith.cmpi eq, %2, %3 : vector<8x512xi32>
    %c0_2 = arith.constant 0 : index
    %c0_3 = arith.constant 0 : index
    %c0_4 = arith.constant 0 : index
    %5 = vector.load %arg1[%c0_2, %c0_3, %c0_4] : memref<1x1x512xf32, #tpu.memory_space<vmem>>, vector<1x1x512xf32>
    %6 = vector.shape_cast %5 : vector<1x1x512xf32> to vector<1x512xf32>
    %7 = vector.shape_cast %6 : vector<1x512xf32> to vector<1x512xf32>
    %8 = vector.broadcast %7 : vector<1x512xf32> to vector<8x512xf32>
    %c1_i32 = arith.constant 1 : i32
    %9 = vector.broadcast %c1_i32 : i32 to vector<8x512xi32>
    %10 = arith.cmpi eq, %2, %9 : vector<8x512xi32>
    %c0_5 = arith.constant 0 : index
    %c0_6 = arith.constant 0 : index
    %c0_7 = arith.constant 0 : index
    %11 = vector.load %arg2[%c0_5, %c0_6, %c0_7] : memref<1x1x512xf32, #tpu.memory_space<vmem>>, vector<1x1x512xf32>
    %12 = vector.shape_cast %11 : vector<1x1x512xf32> to vector<1x512xf32>
    %13 = vector.shape_cast %12 : vector<1x512xf32> to vector<1x512xf32>
    %14 = vector.broadcast %13 : vector<1x512xf32> to vector<8x512xf32>
    %cst = arith.constant 0.000000e+00 : f32
    %15 = vector.broadcast %cst : f32 to vector<8x512xf32>
    %16 = arith.select %10, %14, %15 : vector<8x512xi1>, vector<8x512xf32>
    %17 = arith.select %4, %8, %16 : vector<8x512xi1>, vector<8x512xf32>
    %c1_i32_8 = arith.constant 1 : i32
    %18 = tpu.dynamic_rotate %17 by %c1_i32_8 dim 1 : vector<8x512xf32>, i32 -> vector<8x512xf32>
    %19 = vector.broadcast %0 : vector<1x512xf32> to vector<8x512xf32>
    %20 = arith.mulf %18, %19 : vector<8x512xf32>
    %c511_i32 = arith.constant 511 : i32
    %21 = tpu.dynamic_rotate %17 by %c511_i32 dim 1 : vector<8x512xf32>, i32 -> vector<8x512xf32>
    %22 = vector.broadcast %1 : vector<1x512xf32> to vector<8x512xf32>
    %23 = arith.mulf %21, %22 : vector<8x512xf32>
    %24 = tpu.concatenate %20, %17, %23 in 0 : vector<8x512xf32>, vector<8x512xf32>, vector<8x512xf32> -> vector<24x512xf32>
    %c0_9 = arith.constant 0 : index
    %c0_10 = arith.constant 0 : index
    %25 = vector.load %arg4[%c0_9, %c0_10] : memref<16x24xf32, #tpu.memory_space<vmem>>, vector<16x24xf32>
    %cst_11 = arith.constant dense<0.000000e+00> : vector<16x512xf32>
    %26 = tpu.matmul %25, %24, %cst_11 {dimension_numbers = #tpu.dot_dimension_numbers<[1], [0], [0], [1], [0, 0, 1, 1], [], []>} : vector<16x24xf32>, vector<24x512xf32>, vector<16x512xf32> -> vector<16x512xf32>
    %c0_12 = arith.constant 0 : index
    %c0_13 = arith.constant 0 : index
    %27 = vector.load %arg5[%c0_12, %c0_13] : memref<16x1xf32, #tpu.memory_space<vmem>>, vector<16x1xf32>
    %28 = vector.broadcast %27 : vector<16x1xf32> to vector<16x512xf32>
    %29 = arith.addf %26, %28 : vector<16x512xf32>
    %cst_14 = arith.constant 0.000000e+00 : f32
    %30 = vector.broadcast %cst_14 : f32 to vector<16x512xf32>
    %31 = arith.maximumf %29, %30 : vector<16x512xf32>
    %c1_i32_15 = arith.constant 1 : i32
    %32 = tpu.dynamic_rotate %31 by %c1_i32_15 dim 1 : vector<16x512xf32>, i32 -> vector<16x512xf32>
    %33 = vector.broadcast %0 : vector<1x512xf32> to vector<16x512xf32>
    %34 = arith.mulf %32, %33 : vector<16x512xf32>
    %c511_i32_16 = arith.constant 511 : i32
    %35 = tpu.dynamic_rotate %31 by %c511_i32_16 dim 1 : vector<16x512xf32>, i32 -> vector<16x512xf32>
    %36 = vector.broadcast %1 : vector<1x512xf32> to vector<16x512xf32>
    %37 = arith.mulf %35, %36 : vector<16x512xf32>
    %38 = tpu.concatenate %34, %31, %37 in 0 : vector<16x512xf32>, vector<16x512xf32>, vector<16x512xf32> -> vector<48x512xf32>
    %c0_17 = arith.constant 0 : index
    %c0_18 = arith.constant 0 : index
    %39 = vector.load %arg6[%c0_17, %c0_18] : memref<32x48xf32, #tpu.memory_space<vmem>>, vector<32x48xf32>
    %cst_19 = arith.constant dense<0.000000e+00> : vector<32x512xf32>
    %40 = tpu.matmul %39, %38, %cst_19 {dimension_numbers = #tpu.dot_dimension_numbers<[1], [0], [0], [1], [0, 0, 1, 1], [], []>} : vector<32x48xf32>, vector<48x512xf32>, vector<32x512xf32> -> vector<32x512xf32>
    %c0_20 = arith.constant 0 : index
    %c0_21 = arith.constant 0 : index
    %41 = vector.load %arg7[%c0_20, %c0_21] : memref<32x1xf32, #tpu.memory_space<vmem>>, vector<32x1xf32>
    %42 = vector.broadcast %41 : vector<32x1xf32> to vector<32x512xf32>
    %43 = arith.addf %40, %42 : vector<32x512xf32>
    %cst_22 = arith.constant 0.000000e+00 : f32
    %44 = vector.broadcast %cst_22 : f32 to vector<32x512xf32>
    %45 = arith.maximumf %43, %44 : vector<32x512xf32>
    %c0_23 = arith.constant 0 : index
    %c0_24 = arith.constant 0 : index
    %46 = vector.load %arg8[%c0_23, %c0_24] : memref<32x1xf32, #tpu.memory_space<vmem>>, vector<32x1xf32>
    %47 = vector.broadcast %46 : vector<32x1xf32> to vector<32x512xf32>
    %48 = arith.mulf %45, %47 : vector<32x512xf32>
    %cst_25 = arith.constant dense<0.000000e+00> : vector<512xf32>
    %49 = vector.multi_reduction <add>, %48, %cst_25 [0] : vector<32x512xf32> to vector<512xf32>
    %50 = vector.shape_cast %49 : vector<512xf32> to vector<1x512xf32>
    %c0_26 = arith.constant 0 : index
    %c0_27 = arith.constant 0 : index
    %51 = vector.load %arg9[%c0_26, %c0_27] : memref<1x1xf32, #tpu.memory_space<vmem>>, vector<1x1xf32>
    %52 = vector.broadcast %51 : vector<1x1xf32> to vector<1x512xf32>
    %53 = arith.addf %50, %52 : vector<1x512xf32>
    %c0_28 = arith.constant 0 : index
    %c0_29 = arith.constant 0 : index
    %c0_30 = arith.constant 0 : index
    %54 = vector.load %arg10[%c0_28, %c0_29, %c0_30] : memref<1x1x512xf32, #tpu.memory_space<vmem>>, vector<1x1x512xf32>
    %55 = vector.shape_cast %54 : vector<1x1x512xf32> to vector<1x512xf32>
    %56 = vector.shape_cast %53 : vector<1x512xf32> to vector<1x1x512xf32>
    tpu.vector_store %arg10[%c0_28, %c0_29, %c0_30], %56 {strides = array<i32>} : memref<1x1x512xf32, #tpu.memory_space<vmem>>, vector<1x1x512xf32>,
    return
  }
  func.func @transform_0(%arg0: i32) -> (i32, i32, i32) {
    %c0_i32 = arith.constant 0 : i32
    %c0_i32_0 = arith.constant 0 : i32
    %c0_i32_1 = arith.constant 0 : i32
    return %arg0, %c0_i32, %c0_i32_0 : i32, i32, i32
  }
  func.func @transform_1(%arg0: i32) -> (i32, i32, i32) {
    %c0_i32 = arith.constant 0 : i32
    %c0_i32_0 = arith.constant 0 : i32
    %c0_i32_1 = arith.constant 0 : i32
    return %arg0, %c0_i32, %c0_i32_0 : i32, i32, i32
  }
  func.func @transform_2(%arg0: i32) -> (i32, i32) {
    %c0_i32 = arith.constant 0 : i32
    %c0_i32_0 = arith.constant 0 : i32
    %c0_i32_1 = arith.constant 0 : i32
    return %c0_i32, %c0_i32_0 : i32, i32
  }
  func.func @transform_3(%arg0: i32) -> (i32, i32) {
    %c0_i32 = arith.constant 0 : i32
    %c0_i32_0 = arith.constant 0 : i32
    %c0_i32_1 = arith.constant 0 : i32
    return %c0_i32, %c0_i32_0 : i32, i32
  }
  func.func @transform_4(%arg0: i32) -> (i32, i32) {
    %c0_i32 = arith.constant 0 : i32
    %c0_i32_0 = arith.constant 0 : i32
    %c0_i32_1 = arith.constant 0 : i32
    return %c0_i32, %c0_i32_0 : i32, i32
  }
  func.func @transform_5(%arg0: i32) -> (i32, i32) {
    %c0_i32 = arith.constant 0 : i32
    %c0_i32_0 = arith.constant 0 : i32
    %c0_i32_1 = arith.constant 0 : i32
    return %c0_i32, %c0_i32_0 : i32, i32
  }
  func.func @transform_6(%arg0: i32) -> (i32, i32) {
    %c0_i32 = arith.constant 0 : i32
    %c0_i32_0 = arith.constant 0 : i32
    %c0_i32_1 = arith.constant 0 : i32
    return %c0_i32, %c0_i32_0 : i32, i32
  }
  func.func @transform_7(%arg0: i32) -> (i32, i32) {
    %c0_i32 = arith.constant 0 : i32
    %c0_i32_0 = arith.constant 0 : i32
    %c0_i32_1 = arith.constant 0 : i32
    return %c0_i32, %c0_i32_0 : i32, i32
  }
  func.func @transform_8(%arg0: i32) -> (i32, i32) {
    %c0_i32 = arith.constant 0 : i32
    %c0_i32_0 = arith.constant 0 : i32
    %c0_i32_1 = arith.constant 0 : i32
    return %c0_i32, %c0_i32_0 : i32, i32
  }
  func.func @transform_9(%arg0: i32) -> (i32, i32, i32) {
    %c0_i32 = arith.constant 0 : i32
    %c0_i32_0 = arith.constant 0 : i32
    %c0_i32_1 = arith.constant 0 : i32
    return %arg0, %c0_i32, %c0_i32_0 : i32, i32, i32
  }
}

</mosaic_0001>

<bundles_post_ra>
// kernel: tpu_custom_call.1
= control target key start
LH: loop header
LB: loop body
LE: loop exit
PB: predicated region body
PF: predicated region fallthrough
CT: control target
= control target key end

     0   :  { %s1799_s0 = inlined_call_operand.vmem [shape: f32[2,1,512], index: 0, kind: input, shape index: {}]   ;;  %s1800_s1 = inlined_call_operand.vmem [shape: f32[2,1,512], index: 1, kind: input, shape index: {}]   ;;  %s1801_s2 = inlined_call_operand.vmem [shape: f32[2,512], index: 2, kind: input, shape index: {}]   ;;  %s1802_s3 = inlined_call_operand.vmem [shape: f32[16,24], index: 3, kind: input, shape index: {}]   ;;  %s1803_s4 = inlined_call_operand.vmem [shape: f32[16,1], index: 4, kind: input, shape index: {}]   ;;  %s1804_s5 = inlined_call_operand.vmem [shape: f32[32,48], index: 5, kind: input, shape index: {}]   ;;  %s1805_s6 = inlined_call_operand.vmem [shape: f32[32,1], index: 6, kind: input, shape index: {}]   ;;  %s1806_s7 = inlined_call_operand.vmem [shape: f32[32,1], index: 7, kind: input, shape index: {}]   ;;  %s1807_s8 = inlined_call_operand.<no memory space> [shape: f32[1,1], index: 8, kind: input, shape index: {}]   ;;  %s1808_s9 = inlined_call_operand.hbm [shape: f32[2,1,512], index: 9, kind: output, shape index: {}]  }
   0x1   :  { %v14_v0 = vstv %s1807_s8 }
   0x2   :  { %15 = vst [vmem:[#allocation2] sm:$0x1] %v14_v0 }
   0x3   :  { %16 = vsyncpa [#allocation4], 0 }
   0x4   :  { %18 = vsyncpa [#allocation4 + $0x1], 0  ;;  %s1403_s11 = smov 0   ;;  %s1405_s12 = smov 0  }
   0x5   :  { %s1407_s13 = smov 0   ;;  %s1409_s14 = smov 0  }
   0x6 LB: > { %s1424_s8 = sadd.s32 4294967295, %s1342_s14   ;;  %s1176_s15 = sadd.s32 4294967294, %s1342_s14   ;;  %s1342_s14 = sphi %s1409_s14, %s1814_s14   ;;  %s1338_s13 = sphi %s1407_s13, %s1813_s13   ;;  %s1334_s12 = sphi %s1405_s12, %s1812_s12   ;;  %s1330_s11 = sphi %s1403_s11, %s1811_s11  }
   0x7   : > { %s1428_s16 = sadd.s32 1, %s1342_s14   ;;  %s230_s17 = sadd.s32 1, %s1338_s13 }
   0x8   : > { %s227_s18 = ssub.s32 %s1342_s14, %s1428_s16  ;;  %p240_p0 = scmp.ne.s32.totalorder %s1338_s13, %s1334_s12 }
   0x9   : > { %p228_p1 = scmp.eq.s32.totalorder %s227_s18, 0  ;;  %p241_p2 = scmp.eq.s32.totalorder %s1424_s8, 1 }
   0xa   : > { %p246_p3 = scmp.ne.s32.totalorder %s1334_s12, %s1330_s11  ;;  %p247_p4 = scmp.eq.s32.totalorder %s1176_s15, 1 }
   0xb   : > { %s1439_s19 = scalar_select %p228_p1, %s1338_s13, %s230_s17  }
   0xc   : > { %p1441_p5 = por %p241_p2, %p240_p0  ;;  %p1445_p6 = por %p247_p4, %p246_p3 }
   0xd   : > { %p1179_p7 = scmp.ge.s32.totalorder %s1342_s14, 1  ;;  %p300_p8 = scmp.lt.s32.totalorder %s1342_s14, 3 }
   0xf   : > { %p301_p9 = pnand %p1179_p7, %p300_p8 }
  0x10   : > { %p339_p10 = scmp.lt.s32.totalorder (!%p301_p9), %s1424_s8, 1  ;;  %v350_v1 = vlaneseq (!%p301_p9)  ;;  %s1344_s30 = smov (!%p301_p9), 1   ;;  %v1345_v25 = vmov (!%p301_p9), 0.0   ;;  %v1347_v26 = vmov (!%p301_p9), 0   ;;  %v486_v27 = vld [vmem:[%s1803_s4] sm:$0xff] (!%p301_p9)  ;;  %v487_v28 = vld [vmem:[%s1803_s4 + $0x8] sm:$0xff] (!%p301_p9) }
  0x11   : > { %304 = sbr.rel (%p301_p9) target bundleno = 807 (0x327), region = 56  ;;  %569 = vmatprep.mubr.f32.mxu0 (!%p301_p9), %v1345_v25  ;;  %646 = vmatprep.mubr.f32.mxu1 (!%p301_p9), %v1345_v25  ;;  %s1346_s10 = smov (!%p301_p9), 127   ;;  %v347_v30 = vld [vmem:[%s1801_s2] ss:$2 sm:$0xf] (!%p301_p9)  ;;  %vm498_vm4 = vcmask (!%p301_p9), 195584  }
  0x12   : > { %v1454_v2 = vshrl.u32 (!%p301_p9), %v350_v1, 7  ;;  %1278 = vset.pattern.permute.xlu0 (!%p301_p9), %v1347_v26  ;;  %1279 = vset.pattern.permute.xlu1 (!%p301_p9), %v1347_v26  ;;  %v1509_v29 = vand.u32 (!%p301_p9), 127, %v350_v1  ;;  %v1183_v48 = vld [vmem:[%s1801_s2 + $0x1] ss:$2 sm:$0xf] (!%p301_p9)  ;;  %vm759_vm5 = vcmask (!%p301_p9), 392192  }
  0x13   : > { %s1201_s17 = sshll.u32 (!%p301_p9), %s1424_s8, 6  ;;  %vm1087_vm6 = vcmp.lt.s32.totalorder (!%p301_p9), %v350_v1, 512 }
  0x14   : > { %v1457_v3 = vsub.s32 (!%p301_p9), 2, %v1454_v2  ;;  %v1460_v4 = vsub.s32 (!%p301_p9), 0, %v1454_v2  ;;  %v1469_v5 = vsub.s32 (!%p301_p9), 3, %v1454_v2  ;;  %v1472_v6 = vsub.s32 (!%p301_p9), 1, %v1454_v2  ;;  %s1757_s24 = scalar_lea.hbm (!%p301_p9), %s1808_s9, %s1201_s17 }
  0x15   : > { %vm352_vm0 = vcmp.eq.s32.totalorder (!%p301_p9), %v1454_v2, 0  ;;  %vm375_vm1 = vcmp.eq.s32.totalorder (!%p301_p9), %v1454_v2, 1  ;;  %vm416_vm2 = vcmp.lt.s32.totalorder (!%p301_p9), %v1509_v29, 1  ;;  %vm454_vm3 = vcmp.lt.s32.totalorder (!%p301_p9), %v1509_v29, 127 }
  0x16   : > { %v1516_v33 = vrot.slane (!%p301_p9), %v347_v30, %v1460_v4  ;;  %v1519_v34 = vrot.slane (!%p301_p9), %v347_v30, %v1457_v3  ;;  %v1522_v35 = vrot.slane (!%p301_p9), %v347_v30, %v1472_v6  ;;  %v1525_v36 = vrot.slane (!%p301_p9), %v347_v30, %v1469_v5 }
  0x17   : > { %v1544_v54 = vrot.slane (!%p301_p9), %v1183_v48, %v1469_v5  ;;  %v1547_v55 = vrot.slane (!%p301_p9), %v1183_v48, %v1472_v6  ;;  %v1550_v56 = vrot.slane (!%p301_p9), %v1183_v48, %v1457_v3  ;;  %v1553_v57 = vrot.slane (!%p301_p9), %v1183_v48, %v1460_v4  ;;  %v738_v48 = vld [vmem:[%s1805_s6 + $0x18] sm:$0xff] (!%p301_p9) }
  0x18   : > { %s340_s22 = scalar_select %p339_p10, %s1424_s8, 1 }
  0x19   : > { %s1349_s8 = smov [#allocation3]  }
  0x1a   : > { %s1181_s23 = sshll.u32 %s340_s22, 2  ;;  %s1284_s27 = sshll.u32 %s1349_s8, 4  ;;  %s1285_s27 = int_to_ptr.vmem [resolvable:$false] %s1284_s27 }
  0x1b   : > { %s342_s26 = scalar_lea.vmem %s1799_s0, %s1181_s23  ;;  %s346_s29 = scalar_lea.vmem %s1800_s1, %s1181_s23 }
  0x1c   : > { %v353_v7 = vld [vmem:[%s342_s26] sm:$0xf]  ;;  %s1286_s28 = scalar_lea.vmem %s1285_s27, 128 }
  0x1d   : > { %v376_v8 = vld [vmem:[%s346_s29] sm:$0xf]  ;;  %v366_v9 = vrot.slane %v353_v7, %v1457_v3  ;;  %v358_v11 = vrot.slane %v353_v7, %v1460_v4  ;;  %v370_v13 = vrot.slane %v353_v7, %v1469_v5  ;;  %v362_v15 = vrot.slane %v353_v7, %v1472_v6  ;;  %s336_s29 = sand.u32 1, %s1334_s12  }
  0x1e   : > { %v389_v10 = vrot.slane %v376_v8, %v1457_v3  ;;  %v381_v12 = vrot.slane %v376_v8, %v1460_v4  ;;  %v393_v14 = vrot.slane %v376_v8, %v1469_v5  ;;  %v385_v16 = vrot.slane %v376_v8, %v1472_v6  ;;  %v484_v7 = vld [vmem:[%s1802_s3] sm:$0xff]  ;;  %v485_v8 = vld [vmem:[%s1802_s3 + $0x8] sm:$0xff]  ;;  %s1180_s15 = sshll.u32 %s336_s29, 2  ;;  %s1091_s25 = scalar_lea.sflag [#allocation4], %s336_s29 }
  0x1f   : > { %s338_s18 = scalar_lea.vmem [#allocation3], %s1180_s15 }
  0x20   : > { %v400_v17 = vsel %vm375_vm1, %v389_v10, 0.0  ;;  %v398_v18 = vsel %vm375_vm1, %v381_v12, 0.0  ;;  %v401_v21 = vsel %vm375_vm1, %v393_v14, 0.0  ;;  %v399_v22 = vsel %vm375_vm1, %v385_v16, 0.0  ;;  %s1105_s22 = sshll.u32 %s338_s18, 4  ;;  %s1759_s22 = int_to_ptr.vmem [resolvable:$true] %s1105_s22 }
  0x21   : > { %v404_v19 = vsel %vm352_vm0, %v366_v9, %v400_v17  ;;  %v402_v20 = vsel %vm352_vm0, %v358_v11, %v398_v18  ;;  %v405_v23 = vsel %vm352_vm0, %v370_v13, %v401_v21  ;;  %v403_v24 = vsel %vm352_vm0, %v362_v15, %v399_v22  ;;  %s1280_s26 = scalar_lea.vmem %s1759_s22, 64  ;;  %p1287_p0 = scmp.lt.s32.totalorder %s1759_s22, %s1285_s27 }
  0x22   : > { %410 = vrot.lane.b32.xlu1 %v404_v19, %s1344_s30  ;;  %406 = vrot.lane.b32.xlu0 %v402_v20, %s1344_s30  ;;  %p1281_p11 = scmp.ne.s32.totalorder %s1759_s22, %s1280_s26  ;;  %p1288_p1 = scmp.lt.s32.totalorder %s1286_s28, %s1280_s26 }
  0x24   : > { %p1282_p12 = pnand %p1281_p11, %p1441_p5  ;;  %p1289_p2 = por %p1288_p1, %p1287_p0 }
  0x26   : > { %412 = vrot.lane.b32.xlu1 %v405_v23, %s1344_s30  ;;  %408 = vrot.lane.b32.xlu0 %v403_v24, %s1344_s30  ;;  %p1283_p13 = pneg %p1282_p12 }
  0x28   : > { %p1290_p3 = pnand %p1289_p2, %p1283_p13 }
  0x2a   : > { %448 = vrot.lane.b32.xlu1 %v403_v24, %s1346_s10  ;;  %446 = vrot.lane.b32.xlu0 %v402_v20, %s1346_s10 }
  0x2e   : > { %452 = vrot.lane.b32.xlu1 %v405_v23, %s1346_s10  ;;  %450 = vrot.lane.b32.xlu0 %v404_v19, %s1346_s10 }
  0x32   : > { %490 = vperm.xlu0 %1278, %v486_v27   ;;  %495 = vperm.xlu1 %1279, %v487_v28  }
  0x94   : > { %v411_v31 = vpop.permute.xlu1 %410  ;;  %v407_v32 = vpop.permute.xlu0 %406 }
  0x98   : > { %v413_v37 = vpop.permute.xlu1 %412  ;;  %v409_v38 = vpop.permute.xlu0 %408 }
  0x99   : > { %v417_v39 = vsel %vm416_vm2, %v411_v31, %v413_v37  ;;  %v420_v40 = vsel %vm416_vm2, %v413_v37, %v407_v32  ;;  %v418_v41 = vsel %vm416_vm2, %v409_v38, %v411_v31  ;;  %v419_v42 = vsel %vm416_vm2, %v407_v32, %v409_v38 }
  0x9a   : > { %v442_v43 = vmul.f32 %v1516_v33, %v420_v40  ;;  %v444_v44 = vmul.f32 %v1519_v34, %v418_v41  ;;  %v443_v45 = vmul.f32 %v1522_v35, %v419_v42  ;;  %v445_v46 = vmul.f32 %v1525_v36, %v417_v39 }
  0x9c   : > { %v449_v47 = vpop.permute.xlu1 %448  ;;  %v447_v49 = vpop.permute.xlu0 %446  ;;  %v1202_v50 = vpack.c.bf16 %v403_v24, %v443_v45  ;;  %v1206_v51 = vpack.c.bf16 %v405_v23, %v445_v46  ;;  %v1204_v52 = vpack.c.bf16 %v402_v20, %v442_v43  ;;  %v1208_v53 = vpack.c.bf16 %v404_v19, %v444_v44  ;;  %v735_v45 = vld [vmem:[%s1805_s6] sm:$0xff]  ;;  %v736_v46 = vld [vmem:[%s1805_s6 + $0x8] sm:$0xff] }
  0x9d   : > { %v457_v58 = vsel %vm454_vm3, %v447_v49, %v449_v47 }
  0x9e   : > { %1203 = vmatprep.subr.bf16.mxu0 %v1202_v50  ;;  %1207 = vmatprep.subr.bf16.mxu1 %v1206_v51  ;;  %v480_v6 = vmul.f32 %v1553_v57, %v457_v58  ;;  %v967_v50 = vld [vmem:[%s1806_s7 + $0x8] sm:$0xff]  ;;  %v968_v51 = vld [vmem:[%s1806_s7 + $0x10] sm:$0xff] }
  0x9f   : > { %1205 = vmatpush1.bf16.msra.mxu0 %v1204_v52  ;;  %1209 = vmatpush1.bf16.msra.mxu1 %v1208_v53  ;;  %v969_v52 = vld [vmem:[%s1806_s7 + $0x18] sm:$0xff]  ;;  %v1042_v53 = vld [vmem:[#allocation2] sm:$0x1] }
  0xa0   : > { %v453_v59 = vpop.permute.xlu1 %452  ;;  %v451_v60 = vpop.permute.xlu0 %450 }
  0xa1   : > { %v458_v61 = vsel %vm454_vm3, %v453_v59, %v447_v49  ;;  %v455_v62 = vsel %vm454_vm3, %v451_v60, %v453_v59  ;;  %v456_v63 = vsel %vm454_vm3, %v449_v47, %v451_v60  ;;  %v737_v47 = vld [vmem:[%s1805_s6 + $0x10] sm:$0xff]  ;;  %v966_v49 = vld [vmem:[%s1806_s7] sm:$0xff] }
  0xa2   : > { %v483_v0 = vmul.f32 %v1544_v54, %v458_v61  ;;  %v481_v3 = vmul.f32 %v1547_v55, %v456_v63  ;;  %v482_v5 = vmul.f32 %v1550_v56, %v455_v62 }
  0xa4   : > { %509 = vmatprep.subr.mxu0 %v481_v3  ;;  %586 = vmatprep.subr.mxu1 %v483_v0 }
  0xa5   : > { %510 = vmatpush1.msra.mxu0 %v480_v6  ;;  %587 = vmatpush1.msra.mxu1 %v482_v5 }
  0xa6   : > { %1184 = vmatmul.mubr.msk.f32.vlgmr.msra.gmra.mrb[0].mxu0 %vm498_vm4, %v484_v7  ;;  %1186 = vmatmul.mubr.msk.f32.vlgmr.msra.gmra.mrb[0].mxu1 %vm498_vm4, %v484_v7 }
  0xa7   : > { %575 = vmatprep.mubr.f32.mxu0 %v1345_v25  ;;  %652 = vmatprep.mubr.f32.mxu1 %v1345_v25 }
  0xaa   : > { %1185 = vmatmul.mubr.msk.f32.gmra.mrb[2].mxu0 %vm498_vm4, %v485_v8  ;;  %1187 = vmatmul.mubr.msk.f32.gmra.mrb[2].mxu1 %vm498_vm4, %v485_v8 }
  0xab   : > { %836 = vmatprep.mubr.f32.mxu0 %v1345_v25  ;;  %925 = vmatprep.mubr.f32.mxu1 %v1345_v25 }
  0xb1   : > { %v491_v9 = vpop.permute.xlu0 %490  ;;  %v496_v17 = vpop.permute.xlu1 %495 }
 0x179   : > { %v571_v10 = vpop.f32.mrb[0].mxu0  ;;  %v648_v11 = vpop.f32.mrb[0].mxu1 }
 0x17a   : > { %v573_v12 = vpop.f32.mrb[1].mxu0  ;;  %v649_v13 = vadd.f32 %v648_v11, %v491_v9  ;;  %v650_v14 = vpop.f32.mrb[1].mxu1  ;;  %v572_v15 = vadd.f32 %v571_v10, %v491_v9 }
 0x17b   : > { %v651_v16 = vadd.f32 %v650_v14, %v491_v9  ;;  %v574_v19 = vadd.f32 %v573_v12, %v491_v9 }
 0x17c   : > { %v1577_v18 = vmax.f32 %v572_v15, 0.0  ;;  %v1579_v22 = vmax.f32 %v649_v13, 0.0 }
 0x17d   : > { %v577_v20 = vpop.f32.mrb[2].mxu0  ;;  %v654_v21 = vpop.f32.mrb[2].mxu1  ;;  %v1583_v28 = vmax.f32 %v651_v16, 0.0  ;;  %v1589_v38 = vmax.f32 %v574_v19, 0.0 }
 0x17e   : > { %v578_v23 = vadd.f32 %v577_v20, %v496_v17  ;;  %v655_v24 = vadd.f32 %v654_v21, %v496_v17  ;;  %v579_v26 = vpop.f32.mrb[3].mxu0  ;;  %v656_v27 = vpop.f32.mrb[3].mxu1  ;;  %667 = vrot.lane.b32.xlu1 %v1577_v18, %s1344_s30 }
 0x17f   : > { %v580_v30 = vadd.f32 %v579_v26, %v496_v17  ;;  %v657_v31 = vadd.f32 %v656_v27, %v496_v17 }
 0x180   : > { %v1585_v32 = vmax.f32 %v578_v23, 0.0  ;;  %v1587_v37 = vmax.f32 %v655_v24, 0.0 }
 0x181   : > { %v1591_v39 = vmax.f32 %v580_v30, 0.0  ;;  %v1593_v40 = vmax.f32 %v657_v31, 0.0 }
 0x182   : > { %v1228_v41 = vpack.c.bf16 %v1587_v37, %v1579_v22  ;;  %669 = vrot.lane.b32.xlu0 %v1585_v32, %s1344_s30  ;;  %675 = vrot.lane.b32.xlu1 %v1579_v22, %s1344_s30  ;;  %v1216_v42 = vpack.c.bf16 %v1585_v32, %v1577_v18 }
 0x183   : > { %v1214_v43 = vpack.c.bf16 %v1591_v39, %v1589_v38  ;;  %v1226_v44 = vpack.c.bf16 %v1593_v40, %v1583_v28 }
 0x186   : > { %677 = vrot.lane.b32.xlu0 %v1587_v37, %s1344_s30  ;;  %699 = vrot.lane.b32.xlu1 %v1577_v18, %s1346_s10  ;;  %v733_v18 = vld [vmem:[%s1804_s5 + $0x10] sm:$0xff] }
 0x18a   : > { %701 = vrot.lane.b32.xlu0 %v1585_v32, %s1346_s10  ;;  %707 = vrot.lane.b32.xlu1 %v1579_v22, %s1346_s10  ;;  %v734_v22 = vld [vmem:[%s1804_s5 + $0x18] sm:$0xff] }
 0x18e   : > { %709 = vrot.lane.b32.xlu0 %v1587_v37, %s1346_s10  ;;  %671 = vrot.lane.b32.xlu1 %v1589_v38, %s1344_s30 }
 0x192   : > { %673 = vrot.lane.b32.xlu0 %v1591_v39, %s1344_s30  ;;  %679 = vrot.lane.b32.xlu1 %v1583_v28, %s1344_s30 }
 0x196   : > { %681 = vrot.lane.b32.xlu0 %v1593_v40, %s1344_s30  ;;  %703 = vrot.lane.b32.xlu1 %v1589_v38, %s1346_s10 }
 0x19a   : > { %705 = vrot.lane.b32.xlu0 %v1591_v39, %s1346_s10  ;;  %711 = vrot.lane.b32.xlu1 %v1583_v28, %s1346_s10 }
 0x19e   : > { %713 = vrot.lane.b32.xlu0 %v1593_v40, %s1346_s10  ;;  %741 = vperm.xlu1 %1279, %v735_v45  }
 0x1a2   : > { %746 = vperm.xlu0 %1278, %v736_v46   ;;  %751 = vperm.xlu1 %1279, %v737_v47  }
 0x1a6   : > { %756 = vperm.xlu0 %1278, %v738_v48   ;;  %972 = vperm.xlu1 %1279, %v966_v49  }
 0x1aa   : > { %977 = vperm.xlu0 %1278, %v967_v50   ;;  %982 = vperm.xlu1 %1279, %v968_v51  }
 0x1ae   : > { %987 = vperm.xlu0 %1278, %v969_v52   ;;  %1045 = vperm.xlu1 %1279, %v1042_v53  }
 0x1f0   : > { %v668_v58 = vpop.permute.xlu1 %667 }
 0x1f4   : > { %v676_v59 = vpop.permute.xlu1 %675  ;;  %v670_v60 = vpop.permute.xlu0 %669 }
 0x1f8   : > { %v700_v61 = vpop.permute.xlu1 %699  ;;  %v678_v62 = vpop.permute.xlu0 %677 }
 0x1fc   : > { %v708_v63 = vpop.permute.xlu1 %707  ;;  %v702_v0 = vpop.permute.xlu0 %701 }
 0x200   : > { %v672_v3 = vpop.permute.xlu1 %671  ;;  %v710_v5 = vpop.permute.xlu0 %709 }
 0x201   : > { %v687_v6 = vsel %vm416_vm2, %v668_v58, %v672_v3  ;;  %v685_v19 = vsel %vm416_vm2, %v672_v3, %v676_v59 }
 0x202   : > { %v692_v10 = vmul.f32 %v687_v6, %v1522_v35  ;;  %v693_v31 = vmul.f32 %v685_v19, %v1519_v34 }
 0x204   : > { %v680_v7 = vpop.permute.xlu1 %679  ;;  %v674_v8 = vpop.permute.xlu0 %673 }
 0x205   : > { %v688_v9 = vsel %vm416_vm2, %v670_v60, %v674_v8  ;;  %v689_v11 = vsel %vm416_vm2, %v680_v7, %v668_v58  ;;  %v683_v13 = vsel %vm416_vm2, %v676_v59, %v680_v7  ;;  %v686_v14 = vsel %vm416_vm2, %v674_v8, %v678_v62 }
 0x206   : > { %v696_v12 = vmul.f32 %v688_v9, %v1522_v35  ;;  %v691_v20 = vmul.f32 %v689_v11, %v1516_v33  ;;  %v694_v23 = vmul.f32 %v683_v13, %v1525_v36  ;;  %v697_v24 = vmul.f32 %v686_v14, %v1519_v34 }
 0x208   : > { %v704_v15 = vpop.permute.xlu1 %703  ;;  %v682_v16 = vpop.permute.xlu0 %681  ;;  %v1210_v17 = vpack.c.bf16 %v696_v12, %v692_v10  ;;  %v1224_v51 = vpack.c.bf16 %v697_v24, %v693_v31 }
 0x209   : > { %v684_v21 = vsel %vm416_vm2, %v678_v62, %v682_v16  ;;  %v690_v35 = vsel %vm416_vm2, %v682_v16, %v670_v60  ;;  %v717_v30 = vsel %vm454_vm3, %v704_v15, %v708_v63 }
 0x20a   : > { %v695_v26 = vmul.f32 %v690_v35, %v1516_v33  ;;  %v698_v27 = vmul.f32 %v684_v21, %v1525_v36  ;;  %1211 = vmatprep.subr.bf16.mxu0 %v1210_v17  ;;  %v719_v33 = vsel %vm454_vm3, %v700_v61, %v704_v15  ;;  %v724_v36 = vmul.f32 %v717_v30, %v1547_v55 }
 0x20b   : > { %v723_v62 = vmul.f32 %v719_v33, %v1553_v57 }
 0x20c   : > { %v1212_v45 = vpack.c.bf16 %v695_v26, %v691_v20  ;;  %v712_v46 = vpop.permute.xlu1 %711  ;;  %v706_v47 = vpop.permute.xlu0 %705  ;;  %v1222_v48 = vpack.c.bf16 %v698_v27, %v694_v23 }
 0x20d   : > { %v718_v49 = vsel %vm454_vm3, %v706_v47, %v710_v5  ;;  %v720_v50 = vsel %vm454_vm3, %v702_v0, %v706_v47  ;;  %v715_v34 = vsel %vm454_vm3, %v708_v63, %v712_v46  ;;  %v721_v53 = vsel %vm454_vm3, %v712_v46, %v700_v61 }
 0x20e   : > { %v728_v52 = vmul.f32 %v718_v49, %v1547_v55  ;;  %1213 = vmatpush1.bf16.msra.mxu0 %v1212_v45  ;;  %1223 = vmatprep.subr.bf16.mxu1 %v1222_v48  ;;  %v727_v58 = vmul.f32 %v720_v50, %v1553_v57  ;;  %v725_v38 = vmul.f32 %v715_v34, %v1550_v56 }
 0x20f   : > { %1215 = vmatprep.subr.bf16.mxu0 %v1214_v43  ;;  %1225 = vmatpush1.bf16.msra.mxu1 %v1224_v51  ;;  %v726_v39 = vmul.f32 %v721_v53, %v1544_v54 }
 0x210   : > { %v714_v59 = vpop.permute.xlu0 %713  ;;  %v1218_v60 = vpack.c.bf16 %v728_v52, %v724_v36  ;;  %1227 = vmatprep.subr.bf16.mxu1 %v1226_v44  ;;  %v1220_v57 = vpack.c.bf16 %v727_v58, %v723_v62 }
 0x211   : > { %v716_v55 = vsel %vm454_vm3, %v710_v5, %v714_v59  ;;  %v722_v61 = vsel %vm454_vm3, %v714_v59, %v702_v0 }
 0x212   : > { %v729_v43 = vmul.f32 %v716_v55, %v1550_v56  ;;  %v730_v63 = vmul.f32 %v722_v61, %v1544_v54  ;;  %1217 = vmatpush1.bf16.msra.mxu0 %v1216_v42  ;;  %v731_v56 = vld [vmem:[%s1804_s5] sm:$0xff]  ;;  %v732_v54 = vld [vmem:[%s1804_s5 + $0x8] sm:$0xff] }
 0x213   : > { %1219 = vmatprep.subr.bf16.mxu0 %v1218_v60  ;;  %1229 = vmatpush1.bf16.msra.mxu1 %v1228_v41 }
 0x214   : > { %v1232_v28 = vpack.c.bf16 %v729_v43, %v725_v38  ;;  %v1230_v29 = vpack.c.bf16 %v730_v63, %v726_v39 }
 0x216   : > { %1221 = vmatpush1.bf16.msra.mxu0 %v1220_v57  ;;  %1231 = vmatprep.subr.bf16.mxu1 %v1230_v29 }
 0x217   : > { %1233 = vmatpush1.bf16.msra.mxu1 %v1232_v28 }
 0x219   : > { %1188 = vmatmul.mubr.msk.f32.vlgmr.msra.gmra.mrb[4].mxu0 %vm759_vm5, %v731_v56 }
 0x21a   : > { %842 = vmatprep.mubr.f32.mxu0 %v1345_v25  ;;  %1192 = vmatmul.mubr.msk.f32.vlgmr.msra.gmra.mrb[4].mxu1 %vm759_vm5, %v731_v56 }
 0x21b   : > { %931 = vmatprep.mubr.f32.mxu1 %v1345_v25 }
 0x21d   : > { %1189 = vmatmul.mubr.msk.f32.gmra.mrb[6].mxu0 %vm759_vm5, %v732_v54  ;;  %v742_v32 = vpop.permute.xlu1 %741 }
 0x21e   : > { %848 = vmatprep.mubr.f32.mxu0 %v1345_v25  ;;  %1193 = vmatmul.mubr.msk.f32.gmra.mrb[6].mxu1 %vm759_vm5, %v732_v54 }
 0x21f   : > { %937 = vmatprep.mubr.f32.mxu1 %v1345_v25 }
 0x221   : > { %1190 = vmatmul.mubr.msk.f32.gmra.mrb[8].mxu0 %vm759_vm5, %v733_v18  ;;  %v747_v37 = vpop.permute.xlu0 %746  ;;  %v752_v40 = vpop.permute.xlu1 %751 }
 0x222   : > { %854 = vmatprep.mubr.f32.mxu0 %v1345_v25  ;;  %1194 = vmatmul.mubr.msk.f32.gmra.mrb[8].mxu1 %vm759_vm5, %v733_v18 }
 0x223   : > { %943 = vmatprep.mubr.f32.mxu1 %v1345_v25 }
 0x225   : > { %1191 = vmatmul.mubr.msk.f32.gmra.mrb[10].mxu0 %vm759_vm5, %v734_v22  ;;  %v1743_v0 = vpop.permute.xlu0 %756  ;;  %v973_v14 = vpop.permute.xlu1 %972 }
 0x226   : > { %1195 = vmatmul.mubr.msk.f32.gmra.mrb[10].mxu1 %vm759_vm5, %v734_v22 }
 0x229   : > { %v978_v35 = vpop.permute.xlu0 %977  ;;  %v983_v60 = vpop.permute.xlu1 %982 }
 0x2ec   : > { %v838_v41 = vpop.f32.mrb[4].mxu0 }
 0x2ed   : > { %v839_v42 = vadd.f32 %v838_v41, %v742_v32  ;;  %v840_v44 = vpop.f32.mrb[5].mxu0  ;;  %v927_v5 = vpop.f32.mrb[4].mxu1 }
 0x2ee   : > { %v841_v3 = vadd.f32 %v840_v44, %v742_v32  ;;  %v928_v6 = vadd.f32 %v927_v5, %v742_v32  ;;  %v929_v7 = vpop.f32.mrb[5].mxu1 }
 0x2ef   : > { %v950_v8 = vmax.f32 %v839_v42, 0.0  ;;  %v930_v10 = vadd.f32 %v929_v7, %v742_v32 }
 0x2f0   : > { %v951_v9 = vmax.f32 %v841_v3, 0.0  ;;  %v844_v25 = vpop.f32.mrb[6].mxu0  ;;  %v952_v11 = vmax.f32 %v928_v6, 0.0 }
 0x2f1   : > { %v845_v12 = vadd.f32 %v844_v25, %v747_v37  ;;  %v846_v13 = vpop.f32.mrb[7].mxu0  ;;  %v953_v15 = vmax.f32 %v930_v10, 0.0  ;;  %v933_v17 = vpop.f32.mrb[6].mxu1  ;;  %v990_v23 = vmul.f32 %v973_v14, %v950_v8 }
 0x2f2   : > { %v847_v16 = vadd.f32 %v846_v13, %v747_v37  ;;  %v934_v20 = vadd.f32 %v933_v17, %v747_v37  ;;  %v935_v21 = vpop.f32.mrb[7].mxu1  ;;  %v991_v24 = vmul.f32 %v973_v14, %v951_v9  ;;  %v992_v31 = vmul.f32 %v973_v14, %v952_v11 }
 0x2f3   : > { %v954_v19 = vmax.f32 %v845_v12, 0.0  ;;  %v936_v27 = vadd.f32 %v935_v21, %v747_v37  ;;  %v993_v49 = vmul.f32 %v973_v14, %v953_v15 }
 0x2f4   : > { %v955_v26 = vmax.f32 %v847_v16, 0.0  ;;  %v850_v30 = vpop.f32.mrb[8].mxu0  ;;  %v956_v46 = vmax.f32 %v934_v20, 0.0 }
 0x2f5   : > { %v994_v45 = vmul.f32 %v978_v35, %v954_v19  ;;  %v851_v47 = vadd.f32 %v850_v30, %v752_v40  ;;  %v852_v48 = vpop.f32.mrb[9].mxu0  ;;  %v957_v51 = vmax.f32 %v936_v27, 0.0  ;;  %v939_v36 = vpop.f32.mrb[8].mxu1 }
 0x2f6   : > { %v995_v50 = vmul.f32 %v978_v35, %v955_v26  ;;  %v853_v33 = vadd.f32 %v852_v48, %v752_v40  ;;  %v996_v34 = vmul.f32 %v978_v35, %v956_v46  ;;  %v940_v58 = vadd.f32 %v939_v36, %v752_v40  ;;  %v941_v59 = vpop.f32.mrb[9].mxu1 }
 0x2f7   : > { %v1006_v52 = vadd.f32 %v994_v45, %v990_v23  ;;  %v958_v53 = vmax.f32 %v851_v47, 0.0  ;;  %v997_v55 = vmul.f32 %v978_v35, %v957_v51  ;;  %v942_v38 = vadd.f32 %v941_v59, %v752_v40  ;;  %v988_v40 = vpop.permute.xlu0 %987 }
 0x2f8   : > { %v1015_v62 = vadd.f32 %v995_v50, %v991_v24  ;;  %v959_v61 = vmax.f32 %v853_v33, 0.0  ;;  %v856_v39 = vpop.f32.mrb[10].mxu0  ;;  %v1024_v43 = vadd.f32 %v996_v34, %v992_v31  ;;  %v960_v57 = vmax.f32 %v940_v58, 0.0  ;;  %v1046_v50 = vpop.permute.xlu1 %1045 }
 0x2f9   : > { %v998_v63 = vmul.f32 %v983_v60, %v958_v53  ;;  %v857_v28 = vadd.f32 %v856_v39, %v1743_v0  ;;  %v858_v29 = vpop.f32.mrb[11].mxu0  ;;  %v1033_v56 = vadd.f32 %v997_v55, %v993_v49  ;;  %v961_v18 = vmax.f32 %v942_v38, 0.0  ;;  %v945_v32 = vpop.f32.mrb[10].mxu1 }
 0x2fa   : > { %v999_v54 = vmul.f32 %v983_v60, %v959_v61  ;;  %v859_v22 = vadd.f32 %v858_v29, %v1743_v0  ;;  %v1000_v41 = vmul.f32 %v983_v60, %v960_v57  ;;  %v946_v44 = vadd.f32 %v945_v32, %v1743_v0  ;;  %v947_v3 = vpop.f32.mrb[11].mxu1 }
 0x2fb   : > { %v1007_v37 = vadd.f32 %v1006_v52, %v998_v63  ;;  %v962_v42 = vmax.f32 %v857_v28, 0.0  ;;  %v1001_v6 = vmul.f32 %v983_v60, %v961_v18  ;;  %v948_v8 = vadd.f32 %v947_v3, %v1743_v0 }
 0x2fc   : > { %v1016_v5 = vadd.f32 %v1015_v62, %v999_v54  ;;  %v963_v7 = vmax.f32 %v859_v22, 0.0  ;;  %v1025_v9 = vadd.f32 %v1024_v43, %v1000_v41  ;;  %v964_v25 = vmax.f32 %v946_v44, 0.0 }
 0x2fd   : > { %v1002_v10 = vmul.f32 %v988_v40, %v962_v42  ;;  %v1034_v11 = vadd.f32 %v1033_v56, %v1001_v6  ;;  %v965_v13 = vmax.f32 %v948_v8, 0.0  ;;  %v1348_v46 = vmov 1966171168  }
 0x2fe   : > { %v1003_v12 = vmul.f32 %v988_v40, %v963_v7  ;;  %v1004_v15 = vmul.f32 %v988_v40, %v964_v25  ;;  %v1063_v47 = vunpack.c.l.s4 %v1348_v46  ;;  %v1051_v59 = vrot.slane %v1046_v50, %v1460_v4 }
 0x2ff   : > { %v1008_v14 = vadd.f32 %v1007_v37, %v1002_v10  ;;  %v1005_v17 = vmul.f32 %v988_v40, %v965_v13 }
 0x300   : > { %v1017_v16 = vadd.f32 %v1016_v5, %v1003_v12  ;;  %v1026_v20 = vadd.f32 %v1025_v9, %v1004_v15  ;;  %v1064_v58 = vunpack.c.0.s8 %v1063_v47 }
 0x301   : > { %v1009_v19 = vrot.slane %v1008_v14, 4  ;;  %v1035_v35 = vadd.f32 %v1034_v11, %v1005_v17 }
 0x302   : > { %v1018_v21 = vrot.slane %v1017_v16, 4  ;;  %v1027_v24 = vrot.slane %v1026_v20, 4  ;;  %v1067_v57 = vsub.s32 %v1064_v58, %v1454_v2 }
 0x303   : > { %v1010_v23 = vadd.f32 %v1009_v19, %v1008_v14  ;;  %v1036_v27 = vrot.slane %v1035_v35, 4 }
 0x304   : > { %v1019_v26 = vadd.f32 %v1018_v21, %v1017_v16  ;;  %v1028_v0 = vadd.f32 %v1027_v24, %v1026_v20 }
 0x305   : > { %v1011_v30 = vrot.slane %v1010_v23, 2  ;;  %v1037_v45 = vadd.f32 %v1036_v27, %v1035_v35 }
 0x306   : > { %v1020_v31 = vrot.slane %v1019_v26, 2  ;;  %v1029_v49 = vrot.slane %v1028_v0, 2 }
 0x307   : > { %v1012_v48 = vadd.f32 %v1011_v30, %v1010_v23  ;;  %v1038_v33 = vrot.slane %v1037_v45, 2 }
 0x308   : > { %v1021_v51 = vadd.f32 %v1020_v31, %v1019_v26  ;;  %v1030_v52 = vadd.f32 %v1029_v49, %v1028_v0 }
 0x309   : > { %v1013_v36 = vrot.slane %v1012_v48, 1  ;;  %v1039_v53 = vadd.f32 %v1038_v33, %v1037_v45 }
 0x30a   : > { %v1022_v34 = vrot.slane %v1021_v51, 1  ;;  %v1031_v62 = vrot.slane %v1030_v52, 1 }
 0x30b   : > { %v1014_v60 = vadd.f32 %v1013_v36, %v1012_v48  ;;  %v1040_v61 = vrot.slane %v1039_v53, 1 }
 0x30c   : > { %v1023_v55 = vadd.f32 %v1022_v34, %v1021_v51  ;;  %v1032_v39 = vadd.f32 %v1031_v62, %v1030_v52 }
 0x30d   : > { %v1052_v38 = vadd.f32 %v1051_v59, %v1014_v60  ;;  %v1041_v63 = vadd.f32 %v1040_v61, %v1039_v53 }
 0x30e   : > { %v1053_v43 = vadd.f32 %v1051_v59, %v1023_v55  ;;  %v1054_v28 = vadd.f32 %v1051_v59, %v1032_v39 }
 0x30f   : > { %v1055_v29 = vadd.f32 %v1051_v59, %v1041_v63 }
 0x310   : > { %v1060_v56 = vcombine.low %v1052_v38, %v1053_v43 }
 0x311   : > { %v1061_v54 = vcombine.low %v1054_v28, %v1055_v29 }
 0x312   : > { %v1068_v18 = vrot.slane %v1060_v56, %v1067_v57 }
 0x313   : > { %v1075_v4 = vrot.slane %v1061_v54, %v1067_v57 }
 0x315   : > { %v1076_v22 = vcombine.low %v1068_v18, %v1075_v4 }
 0x317   : > { %v1083_v32 = vrot.slane %v1076_v22, %v1067_v57 }
 0x319   : > { %1089 = vst.msk [vmem:[%s338_s18] sm:$0xf] %vm1087_vm6, %v1083_v32 }
 0x31a   : > { %1293 = shalt.err (!%p1290_p3)
}
 0x31b   : > { %s1294_s10 = scalar_lea.hbm %s1757_s24, 64  ;;  %s1298_s17 = scalar_lea.hbm %s1808_s9, 128 }
 0x31c   : > { %p1295_p4 = scmp.ne.s32.totalorder %s1757_s24, %s1294_s10  ;;  %p1299_p9 = scmp.lt.u32.totalorder %s1757_s24, %s1808_s9 }
 0x31d   : > { %p1300_p10 = scmp.lt.u32.totalorder %s1298_s17, %s1294_s10  ;;  %p1302_p12 = scmp.lt.u32.totalorder %s1294_s10, %s1757_s24 }
 0x31e   : > { %p1296_p7 = pnand %p1295_p4, %p1441_p5 }
 0x31f   : > { %p1301_p11 = por %p1300_p10, %p1299_p9 }
 0x320   : > { %p1297_p8 = pneg %p1296_p7 }
 0x321   : > { %p1303_p13 = por %p1302_p12, %p1301_p11 }
 0x323   : > { %p1304_p0 = pnand %p1303_p13, %p1297_p8 }
 0x325   : > { %1307 = shalt.err (!%p1304_p0)
}
 0x326   : > { %1234 = dma.vmem_to_hbm [thread:$0]  (%p1441_p5), %s1759_s22, 64, %s1757_s24, %s1091_s25  }
 0x327 PF: > { %p1240_p1 = scmp.ge.s32.totalorder %s1342_s14, 2  ;;  %s1117_s30 = sand.u32 1, %s1330_s11  }
 0x328   : > { %s1118_s26 = scalar_lea.sflag [#allocation4], %s1117_s30 }
 0x329   : > { %p1237_p2 = pnand %p1240_p1, %p1445_p6 }
 0x32b   : > { %1325 = dma.done.wait (!%p1237_p2), %s1118_s26, 64  }
 0x32c   : > { %1327 = vsyncadd (!%p1237_p2), %s1118_s26, 4294967232  ;;  %p21_p3 = scmp.ge.s32.totalorder %s1428_s16, 4   ;;  %s1811_s11 = smov %s1334_s12 }
 0x32d   : > { %s1812_s12 = smov %s1338_s13  ;;  %s1813_s13 = smov %s1439_s19 }
 0x32e   : > { %s1814_s14 = smov %s1428_s16  ;;  %23 = sbr.rel (!%p21_p3) target bundleno = 6 (0x6), region = 95 }
 0x335   :  { %1123 = vsyncpa [#allocation4], 1 }
 0x336   :  { %1125 = vsyncpa [#allocation4 + $0x1], 1 }

</bundles_post_ra>
